<compile_context>
chip_gen: v6e
topology: v6e:2x2x1
jax: 0.10.0
libtpu: 0.0.40
codegen_flags: <defaults>
</compile_context>

<pallas_src>
import math

import jax
import jax.numpy as jnp
from jax import lax
from jax.experimental import pallas as pl
from jax.experimental.pallas import tpu as pltpu


# Contract last dim of both operands: A[m,k] x B[n,k] -> [m,n]  (A @ B.T).
_DN_LAST = (((1,), (1,)), ((), ()))
# Standard contraction: A[m,r] x B[r,n] -> [m,n].
_DN_STD = (((1,), (0,)), ((), ()))


def _kernel_acc_in_out(x_ref, w_ref, b_ref, xa_ref, lbT_ref, o_ref):
    """f32 output: accumulate straight into the k-resident output block."""
    k = pl.program_id(2)

    @pl.when(k == 0)
    def _init():
        o_ref[...] = jnp.broadcast_to(
            b_ref[...].astype(o_ref.dtype), o_ref.shape)

    o_ref[...] += lax.dot_general(x_ref[...], w_ref[...], _DN_LAST,
                                  preferred_element_type=jnp.float32)

    @pl.when(k == pl.num_programs(2) - 1)
    def _finalize():
        o_ref[...] += lax.dot_general(
            xa_ref[...], lbT_ref[...].astype(jnp.float32), _DN_STD,
            preferred_element_type=jnp.float32)


def _kernel_acc_scratch(x_ref, w_ref, b_ref, xa_ref, lbT_ref, o_ref, acc_ref):
    """Narrow output dtype: f32 VMEM accumulator, cast on the last k step."""
    k = pl.program_id(2)

    @pl.when(k == 0)
    def _init():
        acc_ref[...] = jnp.broadcast_to(
            b_ref[...].astype(jnp.float32), acc_ref.shape)

    acc_ref[...] += lax.dot_general(x_ref[...], w_ref[...], _DN_LAST,
                                    preferred_element_type=jnp.float32)

    @pl.when(k == pl.num_programs(2) - 1)
    def _finalize():
        lora = lax.dot_general(
            xa_ref[...], lbT_ref[...].astype(jnp.float32), _DN_STD,
            preferred_element_type=jnp.float32)
        o_ref[...] = (acc_ref[...] + lora).astype(o_ref.dtype)


def _round_up(v, m):
    return ((v + m - 1) // m) * m


def _cdiv(a, b):
    return (a + b - 1) // b


def _sublane_align(dtype):
    # 8 sublanes for f32, 16 for bf16, 32 for int8 (packed layouts).
    return max(8, 32 // jnp.dtype(dtype).itemsize)


def _choose_tk(K, target):
    """Return (tk, padded_K). tk divides padded_K exactly; padded_K >= K."""
    if K <= target:
        return K, K                        # single full-K tile (block == dim)
    for cand in range(target, 127, -128):
        if K % cand == 0:
            return cand, K                 # exact multiple-of-128 divisor
    # No clean divisor: zero-pad K (zeros are exact for the reduction) and
    # keep tk bounded so VMEM stays flat and the k pipeline stays deep.
    return target, _round_up(K, target)


def _vmem_limit_bytes(tm, tn, tk, r, x_dt, w_dt, out_dt, use_scratch):
    xi = jnp.dtype(x_dt).itemsize
    wi = jnp.dtype(w_dt).itemsize
    oi = jnp.dtype(out_dt).itemsize
    buf = 2 * (tm * tk * xi          # x tiles (double-buffered)
               + tn * tk * wi        # weight tiles
               + tm * tn * oi        # output tiles
               + tm * r * 4          # xa tiles (f32)
               + r * tn * wi         # lora_B.T tiles
               + tn * wi)            # bias tiles
    if use_scratch:
        buf += tm * tn * 4           # f32 accumulator scratch
    # +30% headroom for compiler-internal scratch; clamp to a v7x-safe ceiling.
    return max(16 << 20, min(int(buf * 1.3) + (2 << 20), 56 << 20))


def lora_linear_forward(x, weight, bias, lora_A, lora_B, *,
                        tm_target=512, tn_target=1024, tk_target=512):
    """LoRALinear forward (unmerged): x [..., in_features] -> [..., out]."""
    orig_shape = x.shape
    K = orig_shape[-1]
    N, Kw = weight.shape
    assert Kw == K
    r = lora_A.shape[0]
    assert lora_B.shape == (N, r)

    x2d = x.reshape(-1, K)
    M = x2d.shape[0]
    out_dtype = x.dtype

    # Hoisted LoRA down-projection: tiny [M, r] GEMM (~r/N of the main FLOPs).
    xa = jnp.dot(x2d, lora_A.T, preferred_element_type=jnp.float32)
    # Lane-dense [r, N] up-projection weight (one-time, tiny transpose).
    lbT = lora_B.T
    bias2d = bias.reshape(1, N)

    # ---- tile selection ----
    tm = min(tm_target, _round_up(M, _sublane_align(x.dtype)))
    tn = min(tn_target, _round_up(N, 128))
    if _cdiv(M, tm) == 1 and N > 128:
        # Single M tile (decode-style): give the j axis >= 2 tiles so both
        # v7x TensorCores get work under "parallel" semantics.
        tn = min(tn, max(128, _round_up(_cdiv(N, 2), 128)))
    tk, Kp = _choose_tk(K, tk_target)
    if Kp != K:
        pad = Kp - K
        x2d = jnp.pad(x2d, ((0, 0), (0, pad)))         # zeros: exact reduction
        weight = jnp.pad(weight, ((0, 0), (0, pad)))

    grid = (_cdiv(M, tm), _cdiv(N, tn), _cdiv(Kp, tk))

    use_scratch = jnp.dtype(out_dtype) != jnp.float32
    kernel = _kernel_acc_scratch if use_scratch else _kernel_acc_in_out
    scratch = [pltpu.VMEM((tm, tn), jnp.float32)] if use_scratch else []

    out = pl.pallas_call(
        kernel,
        out_shape=jax.ShapeDtypeStruct((M, N), out_dtype),
        grid_spec=pltpu.PrefetchScalarGridSpec(
            num_scalar_prefetch=0,
            grid=grid,
            in_specs=[
                pl.BlockSpec((tm, tk), lambda i, j, k: (i, k)),   # x       [M, Kp]
                pl.BlockSpec((tn, tk), lambda i, j, k: (j, k)),   # weight  [N, Kp]
                pl.BlockSpec((1, tn), lambda i, j, k: (0, j)),    # bias    [1, N]
                pl.BlockSpec((tm, r), lambda i, j, k: (i, 0)),    # x@A.T   [M, r]
                pl.BlockSpec((r, tn), lambda i, j, k: (0, j)),    # B.T     [r, N]
            ],
            out_specs=pl.BlockSpec((tm, tn), lambda i, j, k: (i, j)),
            scratch_shapes=scratch,
        ),
        compiler_params=pltpu.CompilerParams(
            dimension_semantics=("parallel", "parallel", "arbitrary"),
            vmem_limit_bytes=_vmem_limit_bytes(
                tm, tn, tk, r, x.dtype, weight.dtype, out_dtype, use_scratch),
        ),
    )(x2d, weight, bias2d, xa, lbT)

    return out.reshape(*orig_shape[:-1], N)


def _reference_f32(x, weight, bias, lora_A, lora_B):
    f32 = jnp.float32
    x, weight, bias = x.astype(f32), weight.astype(f32), bias.astype(f32)
    lora_A, lora_B = lora_A.astype(f32), lora_B.astype(f32)
    return x @ weight.T + bias + (x @ lora_A.T) @ lora_B.T


def _make_params(key, in_features, out_features, r, dtype=jnp.float32):
    kw, kb, ka, kbb = jax.random.split(key, 4)
    bound = 1.0 / math.sqrt(in_features)
    weight = jax.random.uniform(kw, (out_features, in_features),
                                minval=-bound, maxval=bound).astype(dtype)
    bias = jax.random.uniform(kb, (out_features,),
                              minval=-bound, maxval=bound).astype(dtype)
    # lora_A ~ kaiming_uniform(a=sqrt(5)); lora_B is zero-init in the module —
    # use small nonzero values so the LoRA path is actually exercised.
    lora_A = jax.random.uniform(ka, (r, in_features),
                                minval=-bound, maxval=bound).astype(dtype)
    lora_B = (0.01 * jax.random.normal(kbb, (out_features, r))).astype(dtype)
    return weight, bias, lora_A, lora_B


if __name__ == "__main__":
    key = jax.random.PRNGKey(0)
    k1, k2, k3, k4, k5, k6 = jax.random.split(key, 6)

    # Case 1: 3-D activations, small aligned dims, f32 (direct-accumulate path).
    in1, out1, r1 = 32, 64, 4
    x1 = jax.random.normal(k1, (4, 8, in1), dtype=jnp.float32)
    w1, b1, a1, lb1 = _make_params(k2, in1, out1, r1)
    y1 = jax.block_until_ready(lora_linear_forward(x1, w1, b1, a1, lb1))
    ref1 = _reference_f32(x1.reshape(-1, in1), w1, b1, a1, lb1).reshape(4, 8, out1)
    assert y1.shape == (4, 8, out1)
    assert jnp.allclose(y1, ref1, atol=1e-4, rtol=1e-4), "mismatch (case 1)"

    # Case 2: unaligned M (37 rows), out_features not a multiple of 128 —
    # partial M/N blocks plus the single-M-tile j-split (>=2 N tiles).
    in2, out2, r2 = 96, 192, 8
    x2 = jax.random.normal(k3, (37, in2), dtype=jnp.float32)
    w2, b2, a2, lb2 = _make_params(k4, in2, out2, r2)
    y2 = jax.block_until_ready(lora_linear_forward(x2, w2, b2, a2, lb2))
    ref2 = _reference_f32(x2, w2, b2, a2, lb2)
    assert y2.shape == (37, out2)
    assert jnp.allclose(y2, ref2, atol=1e-4, rtol=1e-4), "mismatch (case 2)"

    # Case 3: bf16 output (f32-scratch path) with K=576, which has no
    # multiple-of-128 divisor <= tk -> exercises wrapper-side K zero-padding.
    in3, out3, r3 = 576, 256, 8
    x3 = jax.random.normal(k5, (64, in3), dtype=jnp.float32).astype(jnp.bfloat16)
    w3, b3, a3, lb3 = _make_params(k6, in3, out3, r3, dtype=jnp.bfloat16)
    y3 = jax.block_until_ready(lora_linear_forward(x3, w3, b3, a3, lb3))
    ref3 = _reference_f32(x3, w3, b3, a3, lb3)
    assert y3.shape == (64, out3)
    assert y3.dtype == jnp.bfloat16
    assert jnp.allclose(y3.astype(jnp.float32), ref3, atol=3e-2, rtol=3e-2), \
        "mismatch (case 3)"

    # TODO(synk): train()/eval() weight merge/unmerge is host-side parameter
    # bookkeeping (state mutation), not a kernel op; only forward is implemented.
    print("KERNEL_OK")
</pallas_src>

<mosaic_0001>
module attributes {stable_mosaic.version = 11 : i64} {
  func.func @_kernel_acc_in_out(%arg0: i32, %arg1: i32, %arg2: i32, %arg3: memref<32x32xf32, #tpu.memory_space<vmem>>, %arg4: memref<128x32xf32, #tpu.memory_space<vmem>>, %arg5: memref<1x128xf32, #tpu.memory_space<vmem>>, %arg6: memref<32x4xf32, #tpu.memory_space<vmem>>, %arg7: memref<4x128xf32, #tpu.memory_space<vmem>>, %arg8: memref<32x128xf32, #tpu.memory_space<vmem>>) attributes {dimension_semantics = [#tpu.dimension_semantics<parallel>, #tpu.dimension_semantics<parallel>, #tpu.dimension_semantics<arbitrary>], iteration_bounds = array<i64: 1, 1, 1>, scalar_prefetch = 0 : i64, scratch_operands = 0 : i64, tpu.core_type = #tpu.core_type<tc>, window_params = [{transform_indices = @transform_0, window_bounds = array<i64: 32, 32>}, {transform_indices = @transform_1, window_bounds = array<i64: 128, 32>}, {transform_indices = @transform_2, window_bounds = array<i64: 1, 128>}, {transform_indices = @transform_3, window_bounds = array<i64: 32, 4>}, {transform_indices = @transform_4, window_bounds = array<i64: 4, 128>}, {transform_indices = @transform_5, window_bounds = array<i64: 32, 128>}]} {
    %c0_i32 = arith.constant 0 : i32
    %0 = arith.cmpi eq, %arg2, %c0_i32 : i32
    %1 = arith.extui %0 : i1 to i32
    %c0_i32_0 = arith.constant 0 : i32
    %2 = arith.cmpi ne, %1, %c0_i32_0 : i32
    scf.if %2 {
      %c0_10 = arith.constant 0 : index
      %c0_11 = arith.constant 0 : index
      %12 = vector.load %arg5[%c0_10, %c0_11] : memref<1x128xf32, #tpu.memory_space<vmem>>, vector<1x128xf32>
      %13 = vector.shape_cast %12 : vector<1x128xf32> to vector<1x128xf32>
      %14 = vector.broadcast %13 : vector<1x128xf32> to vector<32x128xf32>
      %c0_12 = arith.constant 0 : index
      %c0_13 = arith.constant 0 : index
      %15 = vector.load %arg8[%c0_12, %c0_13] : memref<32x128xf32, #tpu.memory_space<vmem>>, vector<32x128xf32>
      tpu.vector_store %arg8[%c0_12, %c0_13], %14 {strides = array<i32>} : memref<32x128xf32, #tpu.memory_space<vmem>>, vector<32x128xf32>,
    } else {
    }
    %c0 = arith.constant 0 : index
    %c0_1 = arith.constant 0 : index
    %3 = vector.load %arg8[%c0, %c0_1] : memref<32x128xf32, #tpu.memory_space<vmem>>, vector<32x128xf32>
    %c0_2 = arith.constant 0 : index
    %c0_3 = arith.constant 0 : index
    %4 = vector.load %arg3[%c0_2, %c0_3] : memref<32x32xf32, #tpu.memory_space<vmem>>, vector<32x32xf32>
    %c0_4 = arith.constant 0 : index
    %c0_5 = arith.constant 0 : index
    %5 = vector.load %arg4[%c0_4, %c0_5] : memref<128x32xf32, #tpu.memory_space<vmem>>, vector<128x32xf32>
    %cst = arith.constant dense<0.000000e+00> : vector<32x128xf32>
    %6 = tpu.matmul %4, %5, %cst {dimension_numbers = #tpu.dot_dimension_numbers<[1], [1], [0], [0], [0, 0, 1, 0], [], []>} : vector<32x32xf32>, vector<128x32xf32>, vector<32x128xf32> -> vector<32x128xf32>
    %7 = arith.addf %3, %6 : vector<32x128xf32>
    %c0_6 = arith.constant 0 : index
    %c0_7 = arith.constant 0 : index
    %8 = vector.load %arg8[%c0_6, %c0_7] : memref<32x128xf32, #tpu.memory_space<vmem>>, vector<32x128xf32>
    tpu.vector_store %arg8[%c0_6, %c0_7], %7 {strides = array<i32>} : memref<32x128xf32, #tpu.memory_space<vmem>>, vector<32x128xf32>,
    %c0_i32_8 = arith.constant 0 : i32
    %9 = arith.cmpi eq, %arg2, %c0_i32_8 : i32
    %10 = arith.extui %9 : i1 to i32
    %c0_i32_9 = arith.constant 0 : i32
    %11 = arith.cmpi ne, %10, %c0_i32_9 : i32
    scf.if %11 {
      %c0_10 = arith.constant 0 : index
      %c0_11 = arith.constant 0 : index
      %12 = vector.load %arg8[%c0_10, %c0_11] : memref<32x128xf32, #tpu.memory_space<vmem>>, vector<32x128xf32>
      %c0_12 = arith.constant 0 : index
      %c0_13 = arith.constant 0 : index
      %13 = vector.load %arg6[%c0_12, %c0_13] : memref<32x4xf32, #tpu.memory_space<vmem>>, vector<32x4xf32>
      %c0_14 = arith.constant 0 : index
      %c0_15 = arith.constant 0 : index
      %14 = vector.load %arg7[%c0_14, %c0_15] : memref<4x128xf32, #tpu.memory_space<vmem>>, vector<4x128xf32>
      %cst_16 = arith.constant dense<0.000000e+00> : vector<32x128xf32>
      %15 = tpu.matmul %13, %14, %cst_16 {dimension_numbers = #tpu.dot_dimension_numbers<[1], [0], [0], [1], [0, 0, 1, 1], [], []>} : vector<32x4xf32>, vector<4x128xf32>, vector<32x128xf32> -> vector<32x128xf32>
      %16 = arith.addf %12, %15 : vector<32x128xf32>
      %c0_17 = arith.constant 0 : index
      %c0_18 = arith.constant 0 : index
      %17 = vector.load %arg8[%c0_17, %c0_18] : memref<32x128xf32, #tpu.memory_space<vmem>>, vector<32x128xf32>
      tpu.vector_store %arg8[%c0_17, %c0_18], %16 {strides = array<i32>} : memref<32x128xf32, #tpu.memory_space<vmem>>, vector<32x128xf32>,
    } else {
    }
    return
  }
  func.func @transform_0(%arg0: i32, %arg1: i32, %arg2: i32) -> (i32, i32) {
    %c0_i32 = arith.constant 0 : i32
    return %arg0, %arg2 : i32, i32
  }
  func.func @transform_1(%arg0: i32, %arg1: i32, %arg2: i32) -> (i32, i32) {
    %c0_i32 = arith.constant 0 : i32
    return %arg1, %arg2 : i32, i32
  }
  func.func @transform_2(%arg0: i32, %arg1: i32, %arg2: i32) -> (i32, i32) {
    %c0_i32 = arith.constant 0 : i32
    %c0_i32_0 = arith.constant 0 : i32
    return %c0_i32, %arg1 : i32, i32
  }
  func.func @transform_3(%arg0: i32, %arg1: i32, %arg2: i32) -> (i32, i32) {
    %c0_i32 = arith.constant 0 : i32
    %c0_i32_0 = arith.constant 0 : i32
    return %arg0, %c0_i32 : i32, i32
  }
  func.func @transform_4(%arg0: i32, %arg1: i32, %arg2: i32) -> (i32, i32) {
    %c0_i32 = arith.constant 0 : i32
    %c0_i32_0 = arith.constant 0 : i32
    return %c0_i32, %arg1 : i32, i32
  }
  func.func @transform_5(%arg0: i32, %arg1: i32, %arg2: i32) -> (i32, i32) {
    %c0_i32 = arith.constant 0 : i32
    return %arg0, %arg1 : i32, i32
  }
}

</mosaic_0001>

<bundles_post_ra>
// kernel: tpu_custom_call.1
= control target key start
LH: loop header
LB: loop body
LE: loop exit
PB: predicated region body
PF: predicated region fallthrough
CT: control target
= control target key end

     0   :  { %vm60_vm0 = vcmask 261120   ;;  %vm239_vm1 = vcmask 1043456   ;;  %vm226_vm2 = vcmask 31744   ;;  %s628_s0 = inlined_call_operand.vmem [shape: f32[32,32], index: 0, kind: input, shape index: {}]   ;;  %s629_s1 = inlined_call_operand.vmem [shape: f32[64,32], index: 1, kind: input, shape index: {}]   ;;  %s630_s2 = inlined_call_operand.vmem [shape: f32[1,64], index: 2, kind: input, shape index: {}]   ;;  %s631_s3 = inlined_call_operand.vmem [shape: f32[32,4], index: 3, kind: input, shape index: {}]   ;;  %s632_s4 = inlined_call_operand.vmem [shape: f32[4,64], index: 4, kind: input, shape index: {}]   ;;  %s633_s5 = inlined_call_operand.hbm [shape: f32[32,64], index: 5, kind: output, shape index: {}]  }
   0x1   :  { %v59_v0 = vld [vmem:[%s629_s1 + $0x78] sm:$0xff]  ;;  %v58_v1 = vld [vmem:[%s629_s1 + $0x70] sm:$0xff]  ;;  %v57_v2 = vld [vmem:[%s629_s1 + $0x68] sm:$0xff] }
   0x2   :  { %403 = vmatprep.subr.msk.mxu0 %vm60_vm0, %v59_v0  ;;  %v40_v3 = vld [vmem:[%s628_s0] sm:$0xff]  ;;  %v222_v6 = vld [vmem:[%s631_s3 + $0x8] sm:$0xff]  ;;  %v223_v7 = vld [vmem:[%s631_s3 + $0x10] sm:$0xff] }
   0x3   :  { %404 = vmatpush3.xpose.msk.msra.mxu0 %vm60_vm0, %v59_v0  ;;  %435 = vmatprep.mubr.msk.f32.mxu0 %vm60_vm0, %v40_v3  ;;  %v225_v4 = vld [vmem:[%s632_s4] sm:$0xf] }
   0x4   :  { %405 = vmatprep.subr.msk.mxu0 %vm60_vm0, %v58_v1  ;;  %441 = vmatprep.subr.msk.mxu1 %vm239_vm1, %v225_v4  ;;  %v221_v5 = vld [vmem:[%s631_s3] sm:$0xff] }
   0x5   :  { %v56_v8 = vld [vmem:[%s629_s1 + $0x60] sm:$0xff]  ;;  %442 = vmatpush3.msk.msra.mxu1 %vm239_vm1, %v225_v4  ;;  %443 = vmatprep.mubr.msk.f32.mxu1 %vm226_vm2, %v221_v5 }
   0x7   :  { %406 = vmatpush3.xpose.msk.msra.mxu0 %vm60_vm0, %v58_v1 }
   0x8   :  { %407 = vmatprep.subr.msk.mxu0 %vm60_vm0, %v57_v2 }
   0x9   :  { %10 = vsyncpa [#allocation3], 0  ;;  %444 = vmatmul.mubr.msk.f32.vlgmr.msra.gmra.mxu1 %vm226_vm2, %v222_v6  ;;  %v224_v9 = vld [vmem:[%s631_s3 + $0x18] sm:$0xff]  ;;  %v54_v11 = vld [vmem:[%s629_s1 + $0x50] sm:$0xff]  ;;  %s474_s3 = smov [#allocation2]  }
   0xa   :  { %446 = vmatprep.mubr.msk.f32.mxu1 %vm226_vm2, %v223_v7  ;;  %v55_v10 = vld [vmem:[%s629_s1 + $0x58] sm:$0xff]  ;;  %v53_v12 = vld [vmem:[%s629_s1 + $0x48] sm:$0xff]  ;;  %v52_v13 = vld [vmem:[%s629_s1 + $0x40] sm:$0xff] }
   0xb   :  { %408 = vmatpush3.xpose.msk.msra.mxu0 %vm60_vm0, %v57_v2  ;;  %v51_v14 = vld [vmem:[%s629_s1 + $0x38] sm:$0xff]  ;;  %v50_v15 = vld [vmem:[%s629_s1 + $0x30] sm:$0xff]  ;;  %v49_v16 = vld [vmem:[%s629_s1 + $0x28] sm:$0xff] }
   0xc   :  { %409 = vmatprep.subr.msk.mxu0 %vm60_vm0, %v56_v8  ;;  %v48_v17 = vld [vmem:[%s629_s1 + $0x20] sm:$0xff]  ;;  %v47_v18 = vld [vmem:[%s629_s1 + $0x18] sm:$0xff]  ;;  %v46_v19 = vld [vmem:[%s629_s1 + $0x10] sm:$0xff] }
   0xd   :  { %447 = vmatmul.mubr.msk.f32.gmra.mxu1 %vm226_vm2, %v224_v9  ;;  %v45_v20 = vld [vmem:[%s629_s1 + $0x8] sm:$0xff]  ;;  %v44_v21 = vld [vmem:[%s629_s1] sm:$0xff]  ;;  %v42_v23 = vld [vmem:[%s628_s0 + $0x10] sm:$0xff] }
   0xe   :  { %v41_v22 = vld [vmem:[%s628_s0 + $0x8] sm:$0xff]  ;;  %v43_v24 = vld [vmem:[%s628_s0 + $0x18] sm:$0xff]  ;;  %v352_v26 = vld [vmem:[%s630_s2] ss:$0 sm:$0xff]  ;;  %s341_s0 = sshll.u32 %s474_s3, 4  ;;  %s342_s0 = int_to_ptr.vmem [resolvable:$true] %s341_s0 }
   0xf   :  { %410 = vmatpush3.xpose.msk.msra.mxu0 %vm60_vm0, %v56_v8  ;;  %s452_s2 = scalar_lea.vmem %s342_s0, 512  ;;  %p457_p1 = scmp.lt.s32.totalorder %s342_s0, %s342_s0 }
  0x10   :  { %411 = vmatprep.subr.msk.mxu0 %vm60_vm0, %v55_v10  ;;  %p453_p0 = scmp.ne.s32.totalorder %s342_s0, %s452_s2  ;;  %p458_p2 = scmp.lt.s32.totalorder %s452_s2, %s452_s2 }
  0x12   :  { %p459_p3 = por %p458_p2, %p457_p1 }
  0x13   :  { %412 = vmatpush3.xpose.msk.msra.mxu0 %vm60_vm0, %v55_v10 }
  0x14   :  { %413 = vmatprep.subr.msk.mxu0 %vm60_vm0, %v54_v11  ;;  %p460_p4 = pnand %p459_p3, %p453_p0 }
  0x17   :  { %414 = vmatpush3.xpose.msk.msra.mxu0 %vm60_vm0, %v54_v11 }
  0x18   :  { %415 = vmatprep.subr.msk.mxu0 %vm60_vm0, %v53_v12 }
  0x1b   :  { %416 = vmatpush3.xpose.msk.msra.mxu0 %vm60_vm0, %v53_v12 }
  0x1c   :  { %417 = vmatprep.subr.msk.mxu0 %vm60_vm0, %v52_v13 }
  0x1f   :  { %418 = vmatpush3.xpose.msk.msra.mxu0 %vm60_vm0, %v52_v13 }
  0x20   :  { %419 = vmatprep.subr.msk.mxu0 %vm60_vm0, %v51_v14 }
  0x23   :  { %420 = vmatpush3.xpose.msk.msra.mxu0 %vm60_vm0, %v51_v14 }
  0x24   :  { %421 = vmatprep.subr.msk.mxu0 %vm60_vm0, %v50_v15 }
  0x27   :  { %422 = vmatpush3.xpose.msk.msra.mxu0 %vm60_vm0, %v50_v15 }
  0x28   :  { %423 = vmatprep.subr.msk.mxu0 %vm60_vm0, %v49_v16 }
  0x2b   :  { %424 = vmatpush3.xpose.msk.msra.mxu0 %vm60_vm0, %v49_v16 }
  0x2c   :  { %425 = vmatprep.subr.msk.mxu0 %vm60_vm0, %v48_v17 }
  0x2f   :  { %426 = vmatpush3.xpose.msk.msra.mxu0 %vm60_vm0, %v48_v17 }
  0x30   :  { %427 = vmatprep.subr.msk.mxu0 %vm60_vm0, %v47_v18 }
  0x33   :  { %428 = vmatpush3.xpose.msk.msra.mxu0 %vm60_vm0, %v47_v18 }
  0x34   :  { %429 = vmatprep.subr.msk.mxu0 %vm60_vm0, %v46_v19 }
  0x37   :  { %430 = vmatpush3.xpose.msk.msra.mxu0 %vm60_vm0, %v46_v19 }
  0x38   :  { %431 = vmatprep.subr.msk.mxu0 %vm60_vm0, %v45_v20 }
  0x3b   :  { %432 = vmatpush3.xpose.msk.msra.mxu0 %vm60_vm0, %v45_v20 }
  0x3c   :  { %433 = vmatprep.subr.msk.mxu0 %vm60_vm0, %v44_v21 }
  0x3f   :  { %434 = vmatpush3.xpose.msk.msra.mxu0 %vm60_vm0, %v44_v21 }
  0x42   :  { %436 = vmatmul.mubr.msk.f32.vlgmr.msra.gmra.mxu0 %vm60_vm0, %v41_v22 }
  0x43   :  { %438 = vmatprep.mubr.msk.f32.mxu0 %vm60_vm0, %v42_v23 }
  0x46   :  { %439 = vmatmul.mubr.msk.f32.gmra.mxu0 %vm60_vm0, %v43_v24 }
  0xc9   :  { %v445_v25 = vpop.f32.mrf.mxu1 }
  0xcb   :  { %v309_v28 = vpop.f32.mrf.mxu1 }
  0xcd   :  { %v448_v34 = vpop.f32.mrf.mxu1 }
  0xcf   :  { %v319_v40 = vpop.f32.mrf.mxu1 }
 0x102   :  { %v437_v27 = vpop.f32.mrf.mxu0 }
 0x103   :  { %v207_v29 = vadd.f32 %v437_v27, %v352_v26 }
 0x104   :  { %v187_v30 = vpop.f32.mrf.mxu0 }
 0x105   :  { %v206_v31 = vadd.f32 %v352_v26, %v187_v30  ;;  %v329_v32 = vadd.f32 %v445_v25, %v207_v29 }
 0x106   :  { %v440_v33 = vpop.f32.mrf.mxu0 }
 0x107   :  { %v209_v35 = vadd.f32 %v440_v33, %v352_v26  ;;  %333 = vst [vmem:[#allocation2 + $0x8] sm:$0xff] %v329_v32  ;;  %v328_v36 = vadd.f32 %v309_v28, %v206_v31 }
 0x108   :  { %v197_v37 = vpop.f32.mrf.mxu0 }
 0x109   :  { %v208_v38 = vadd.f32 %v352_v26, %v197_v37  ;;  %332 = vst [vmem:[#allocation2] sm:$0xff] %v328_v36  ;;  %v331_v39 = vadd.f32 %v448_v34, %v209_v35 }
 0x10b   :  { %335 = vst [vmem:[#allocation2 + $0x18] sm:$0xff] %v331_v39  ;;  %v330_v41 = vadd.f32 %v319_v40, %v208_v38 }
 0x10d   :  { %334 = vst [vmem:[#allocation2 + $0x10] sm:$0xff] %v330_v41 }
 0x10e   :  { %463 = shalt.err (!%p460_p4)
}
 0x10f   :  { %s475_s16 = smov 128   ;;  %s476_s17 = smov 8  }
 0x110   :  { %347 = dma.vmem_to_hbm [thread:$0]  %s342_s0, 512, %s633_s5, [#allocation3], %s475_s16, %s475_s16, %s476_s17  }
 0x111   :  { %472 = dma.done.wait [#allocation3], 512  }
 0x112   :  { %473 = vsyncadd [#allocation3], 4294966784 }
 0x113   :  { %351 = vsyncpa [#allocation3], 1 }

</bundles_post_ra>
